<compile_context>
chip_gen: v5e
topology: v5e:2x2
jax: 0.10.0
libtpu: 0.0.40
codegen_flags: <defaults>
</compile_context>

<pallas_src>
import functools

import jax
import jax.numpy as jnp
from jax.experimental import pallas as pl
from jax.experimental.pallas import tpu as pltpu


_VMEM = pl.BlockSpec(memory_space=pltpu.MemorySpace.VMEM)
_SMEM = pl.BlockSpec(memory_space=pltpu.MemorySpace.SMEM)

_NEG_FILL = -1e30   # finite "minus infinity" for masking (avoids inf-inf NaNs)


def _round_up(x, m):
    return (x + m - 1) // m * m


def _scalar_call(kernel, in_specs, *inputs):
    """Run a single-block kernel producing one f32 scalar (stored in SMEM as (1,1))."""
    out = pl.pallas_call(
        kernel,
        out_shape=jax.ShapeDtypeStruct((1, 1), jnp.float32),
        in_specs=in_specs,
        out_specs=pl.BlockSpec(memory_space=pltpu.MemorySpace.SMEM),
    )(*inputs)
    return out[0, 0]


# ------------- fused sweep: caption CE + negative-learning loss over [R, V] -------------
def _fused_sweep_kernel(logits_ref, gathered_ref, cap_ref, neg_ref, m_ref, z_ref,
                        *, v_total, v_tile, n_sampled):
    """One (rows, vocab) tile of the fused sweep.

    m_ref / z_ref (VMEM scratch, [Rt,1]) hold the online-softmax running max / sum; the
    vocab axis is the innermost ("arbitrary") grid axis, so they are re-initialised at
    k == 0 for every row tile.  On the last vocab tile, the picked-label column and the
    sampled-negative columns of `gathered_ref` ([Rt, T_pad], resident across the vocab
    axis) are combined with (m, z) to produce the per-row caption CE and negative loss.
    """
    k = pl.program_id(1)
    nv = pl.num_programs(1)

    @pl.when(k == 0)
    def _init():
        m_ref[...] = jnp.full(m_ref.shape, -jnp.inf, jnp.float32)
        z_ref[...] = jnp.zeros(z_ref.shape, jnp.float32)

    tile = logits_ref[...]                                           # [Rt, Vt] native dtype
    if v_total % v_tile != 0:
        # Only emitted when the last vocab tile is ragged (trace-time condition): mask the
        # out-of-bounds lanes so they don't corrupt the row max / sum.
        vid = k * v_tile + jax.lax.broadcasted_iota(jnp.int32, tile.shape, 1)
        tile = jnp.where(vid < v_total, tile, jnp.full_like(tile, _NEG_FILL))

    m_prev = m_ref[...]
    tile_max = jnp.max(tile, axis=-1, keepdims=True).astype(jnp.float32)
    m_new = jnp.maximum(m_prev, tile_max)
    # cast to f32 only at the exp site (keeps the streamed tile in its input dtype)
    e = jnp.exp(tile.astype(jnp.float32) - m_new)
    z_ref[...] = jnp.exp(m_prev - m_new) * z_ref[...] + jnp.sum(e, axis=-1, keepdims=True)
    m_ref[...] = m_new

    @pl.when(k == nv - 1)
    def _finalize():
        m = m_ref[...]                                               # [Rt, 1]
        z = z_ref[...]
        logz = m + jnp.log(z)
        g = gathered_ref[...].astype(jnp.float32)                    # [Rt, T_pad]
        # column n_sampled holds the label logit -> caption cross entropy (lse - picked)
        cap_ref[...] = logz - g[:, n_sampled:n_sampled + 1]
        # columns [0, n_sampled) hold the sampled negative-token logits
        inv_z = pl.reciprocal(z, approx=True)                        # one EUP recip per row
        p = jnp.exp(g - m) * inv_z
        col = jax.lax.broadcasted_iota(jnp.int32, g.shape, 1)
        terms = jnp.where(col < n_sampled, jnp.log1p(-p), 0.0)
        neg_ref[...] = -jnp.sum(terms, axis=-1, keepdims=True)


def _fused_caption_negative(logits_flat, gathered, n_sampled,
                            *, row_tile_max=256, block_bytes_max=8 << 20):
    """Single HBM pass over [R, V] logits -> (per-row caption CE, per-row negative loss)."""
    r, v = logits_flat.shape
    _, t_pad = gathered.shape

    # Row tile: multiple of 8, capped so the parallel row axis keeps >= 2 tiles (v7x 2 TCs).
    row_tile = min(row_tile_max, _round_up(pl.cdiv(r, 2), 8))
    # Vocab tile: full V when it fits the per-block byte budget; otherwise the largest
    # multiple of 128 that divides V (no masking); otherwise the budget (ragged, masked).
    itemsize = jnp.dtype(logits_flat.dtype).itemsize
    v_budget = max(128, (block_bytes_max // (row_tile * itemsize)) // 128 * 128)
    if v <= v_budget:
        v_tile = v
    else:
        v_tile = None
        for mult in range(v_budget // 128, 0, -1):
            if v % (mult * 128) == 0:
                v_tile = mult * 128
                break
        if v_tile is None:
            v_tile = v_budget
    n_row = pl.cdiv(r, row_tile)
    n_v = pl.cdiv(v, v_tile)

    kernel = functools.partial(_fused_sweep_kernel,
                               v_total=v, v_tile=v_tile, n_sampled=n_sampled)
    row_spec = pl.BlockSpec((row_tile, 1), lambda i, k: (i, 0))
    cap_row, neg_row = pl.pallas_call(
        kernel,
        out_shape=(jax.ShapeDtypeStruct((r, 1), jnp.float32),
                   jax.ShapeDtypeStruct((r, 1), jnp.float32)),
        grid_spec=pltpu.PrefetchScalarGridSpec(
            num_scalar_prefetch=0,
            grid=(n_row, n_v),
            in_specs=[pl.BlockSpec((row_tile, v_tile), lambda i, k: (i, k)),
                      pl.BlockSpec((row_tile, t_pad), lambda i, k: (i, 0))],
            out_specs=(row_spec, row_spec),
            scratch_shapes=[pltpu.VMEM((row_tile, 1), jnp.float32),
                            pltpu.VMEM((row_tile, 1), jnp.float32)]),
        compiler_params=pltpu.CompilerParams(
            dimension_semantics=("parallel", "arbitrary"),   # rows shard across TCs
            vmem_limit_bytes=48 << 20),
    )(logits_flat, gathered)
    return cap_row[:, 0], neg_row[:, 0]


# ------------------------------- CLIP contrastive loss -------------------------------
def _clip_loss_kernel(scale_ref, img_ref, txt_ref, out_ref):
    scale = scale_ref[0]
    img = img_ref[...]                           # no pre-cast: bf16 inputs feed the MXU directly
    txt = txt_ref[...]
    dn = (((1,), (1,)), ((), ()))                # contract over D; avoids explicit .T transpose
    logits_i = scale * jax.lax.dot_general(img, txt, dn, preferred_element_type=jnp.float32)
    diag = scale * jnp.sum(img.astype(jnp.float32) * txt.astype(jnp.float32), axis=-1)

    # image->text: lane-axis logsumexp of logits_i
    m_r = jnp.max(logits_i, axis=-1)
    lse_r = m_r + jnp.log(jnp.sum(jnp.exp(logits_i - m_r[:, None]), axis=-1))
    # text->image: logits_per_text == logits_i.T, so use a column-axis logsumexp
    # of the SAME matmul result (one MXU pass instead of two).
    m_c = jnp.max(logits_i, axis=0)
    lse_c = m_c + jnp.log(jnp.sum(jnp.exp(logits_i - m_c[None, :]), axis=0))

    loss_i = jnp.mean(lse_r - diag)
    loss_t = jnp.mean(lse_c - diag)
    out_ref[0, 0] = 0.5 * (loss_i + loss_t)


# ---------------------------------- triplet loss ----------------------------------
def _triplet_loss_kernel(a_ref, p_ref, n_ref, out_ref, *, margin, eps):
    a = a_ref[...].astype(jnp.float32)
    p = p_ref[...].astype(jnp.float32)
    n = n_ref[...].astype(jnp.float32)
    d_ap = jnp.sqrt(jnp.sum((a - p + eps) ** 2, axis=-1))
    d_an = jnp.sqrt(jnp.sum((a - n + eps) ** 2, axis=-1))
    out_ref[0, 0] = jnp.mean(jnp.maximum(d_ap - d_an + margin, 0.0))


# --------------------------- glue: negative-token sampling ---------------------------
def _sample_negative_tokens(key, logits, targets, tokens_num, token_factor):
    """top-(T*F) non-target tokens per position, then T uniform samples w/o replacement.

    Equivalent to sample_unshared_tokens_descending + randomly_sample_from_set, but uses a
    [B,V] scatter (not a [B,S,V] one-hot) for the per-batch target mask and one batched
    top_k of uniform keys instead of B*S length-K permutations.
    """
    b, s, v = logits.shape
    k = tokens_num * token_factor
    target_present = jnp.zeros((b, v), jnp.bool_).at[
        jnp.arange(b)[:, None], targets].set(True)                     # [B, V]
    masked = jnp.where(target_present[:, None, :], -jnp.inf, logits)   # [B, S, V]
    # TODO(synk): like the torch reference, assumes >= tokens_num*token_factor non-target
    # tokens; for realistic V (>=32k) this exact top_k dominates end-to-end time — consider
    # jax.lax.approx_max_k or a dedicated Pallas top-k kernel.
    topk_idx = jax.lax.top_k(masked, k)[1]                             # [B, S, K]
    u = jax.random.uniform(key, (b, s, k))
    sel = jax.lax.top_k(u, tokens_num)[1]                              # uniform w/o replacement
    return jnp.take_along_axis(topk_idx, sel, axis=-1)                 # [B, S, T]


# -------------------------------------- module --------------------------------------
class PositiveNegativeTripletLoss:
    def __init__(self, caption_loss_weight, clip_loss_weight, triplet_loss_weight,
                 negative_loss_weight, pad_id=0, tokens_num=1000, token_factor=32):
        self.caption_loss_weight = caption_loss_weight
        self.clip_loss_weight = clip_loss_weight
        self.triplet_loss_weight = triplet_loss_weight
        self.negative_loss_weight = negative_loss_weight
        self.pad_id = pad_id   # stored for parity; torch's CrossEntropyLoss uses no ignore_index
        # torch module hard-codes tokens_num=1000, token_factor=32 (needs V >= 32000);
        # exposed so the small-vocab synthetic test can use smaller values.
        self.tokens_num = tokens_num
        self.token_factor = token_factor
        self._triplet_margin = 1.0   # nn.TripletMarginLoss defaults
        self._triplet_eps = 1e-6

    def __call__(self, image_features, text_features, logits, labels, logit_scale,
                 targets, rng_key):
        # anchors at 0::3, positives at 1::3, negatives at 2::3 (mask[::3] pattern)
        # TODO(synk): the strided slice materializes an [Ba,S,V] copy; it is reused by the
        # sampling top_k below, so expressing the stride in the sweep's index_map buys
        # nothing until the sampling glue is also rewritten.
        anchor_logits = logits[0::3]
        anchor_labels = labels[0::3].astype(jnp.int32)
        anchor_img = image_features[0::3]
        anchor_txt = text_features[0::3]
        anchor_targets = targets[0::3]

        ba, s, v = anchor_logits.shape
        r = ba * s
        t = self.tokens_num
        flat_logits = anchor_logits.reshape(r, v)
        flat_labels = anchor_labels.reshape(r)

        # ---- glue: sample negative tokens, then ONE gather of [sampled | label | pad] ----
        sampled = _sample_negative_tokens(
            rng_key, anchor_logits, anchor_targets, t, self.token_factor)     # [Ba, S, T]
        t_pad = _round_up(t + 1, 128)          # lane-dense block for the fused kernel
        idx = jnp.concatenate(
            [sampled.reshape(r, t).astype(jnp.int32),
             flat_labels.reshape(r, 1),
             jnp.zeros((r, t_pad - t - 1), jnp.int32)], axis=-1)              # [R, T_pad]
        gathered = jnp.take_along_axis(flat_logits, idx, axis=-1)             # [R, T_pad]

        # ---- fused sweep: per-row caption CE + negative-learning loss ----
        cap_row, neg_row = _fused_caption_negative(flat_logits, gathered, n_sampled=t)
        caption_loss = self.caption_loss_weight * (jnp.sum(cap_row) / r)
        negative_loss = self.negative_loss_weight * jnp.sum(neg_row)

        # ---- clip contrastive loss (world_size == 1 path) ----
        if self.clip_loss_weight:
            scale = jnp.asarray([logit_scale], jnp.float32)
            clip_loss = self.clip_loss_weight * _scalar_call(
                _clip_loss_kernel, [_SMEM, _VMEM, _VMEM], scale, anchor_img, anchor_txt)
        else:
            clip_loss = jnp.asarray(0.0, jnp.float32)

        # ---- triplet margin loss ----
        anchors = image_features[0::3]
        positives = image_features[1::3]
        negatives = image_features[2::3]
        triplet_kernel = functools.partial(
            _triplet_loss_kernel, margin=self._triplet_margin, eps=self._triplet_eps)
        triplet_loss = self.triplet_loss_weight * _scalar_call(
            triplet_kernel, [_VMEM, _VMEM, _VMEM], anchors, positives, negatives)

        return clip_loss, caption_loss, negative_loss, triplet_loss


if __name__ == "__main__":
    key = jax.random.PRNGKey(0)
    k1, k2, k3, k4, k5, k_sample = jax.random.split(key, 6)

    B, D, S, V = 6, 32, 8, 64          # B multiple of 3 (anchor/positive/negative triplets)
    image_features = jax.random.normal(k1, (B, D), jnp.float32)
    text_features = jax.random.normal(k2, (B, D), jnp.float32)
    logits = jax.random.normal(k3, (B, S, V), jnp.float32)
    labels = jax.random.randint(k4, (B, S), 0, V, jnp.int32)
    targets = jax.random.randint(k5, (B, S), 0, V, jnp.int32)
    logit_scale = 2.5

    loss_mod = PositiveNegativeTripletLoss(
        caption_loss_weight=2.0,
        clip_loss_weight=1.0,
        triplet_loss_weight=0.5,
        negative_loss_weight=0.25,
        tokens_num=8,       # scaled down from 1000 for the small synthetic vocab
        token_factor=4,     # scaled down from 32
    )

    out = loss_mod(image_features, text_features, logits, labels, logit_scale,
                   targets, k_sample)
    out = tuple(jax.block_until_ready(o) for o in out)
    print("KERNEL_OK")
</pallas_src>

<mosaic_0001>
module attributes {stable_mosaic.version = 11 : i64} {
  func.func @_fused_sweep_kernel(%arg0: i32, %arg1: i32, %arg2: memref<8x64xf32, #tpu.memory_space<vmem>>, %arg3: memref<8x128xf32, #tpu.memory_space<vmem>>, %arg4: memref<8x1xf32, #tpu.memory_space<vmem>>, %arg5: memref<8x1xf32, #tpu.memory_space<vmem>>, %arg6: memref<8x1xf32, #tpu.memory_space<vmem>>, %arg7: memref<8x1xf32, #tpu.memory_space<vmem>>) attributes {dimension_semantics = [#tpu.dimension_semantics<parallel>, #tpu.dimension_semantics<arbitrary>], iteration_bounds = array<i64: 2, 1>, scalar_prefetch = 0 : i64, scratch_operands = 2 : i64, tpu.core_type = #tpu.core_type<tc>, window_params = [{transform_indices = @transform_0, window_bounds = array<i64: 8, 64>}, {transform_indices = @transform_1, window_bounds = array<i64: 8, 128>}, {transform_indices = @transform_2, window_bounds = array<i64: 8, 1>}, {transform_indices = @transform_3, window_bounds = array<i64: 8, 1>}]} {
    %c0_i32 = arith.constant 0 : i32
    %0 = arith.cmpi eq, %arg1, %c0_i32 : i32
    %1 = arith.extui %0 : i1 to i32
    %c0_i32_0 = arith.constant 0 : i32
    %2 = arith.cmpi ne, %1, %c0_i32_0 : i32
    scf.if %2 {
      %cst_13 = arith.constant 0xFF800000 : f32
      %23 = vector.broadcast %cst_13 : f32 to vector<8x1xf32>
      %c0_14 = arith.constant 0 : index
      %c0_15 = arith.constant 0 : index
      %24 = vector.load %arg6[%c0_14, %c0_15] : memref<8x1xf32, #tpu.memory_space<vmem>>, vector<8x1xf32>
      tpu.vector_store %arg6[%c0_14, %c0_15], %23 {strides = array<i32>} : memref<8x1xf32, #tpu.memory_space<vmem>>, vector<8x1xf32>,
      %cst_16 = arith.constant 0.000000e+00 : f32
      %25 = vector.broadcast %cst_16 : f32 to vector<8x1xf32>
      %c0_17 = arith.constant 0 : index
      %c0_18 = arith.constant 0 : index
      %26 = vector.load %arg7[%c0_17, %c0_18] : memref<8x1xf32, #tpu.memory_space<vmem>>, vector<8x1xf32>
      tpu.vector_store %arg7[%c0_17, %c0_18], %25 {strides = array<i32>} : memref<8x1xf32, #tpu.memory_space<vmem>>, vector<8x1xf32>,
    } else {
    }
    %c0 = arith.constant 0 : index
    %c0_1 = arith.constant 0 : index
    %3 = vector.load %arg2[%c0, %c0_1] : memref<8x64xf32, #tpu.memory_space<vmem>>, vector<8x64xf32>
    %c0_2 = arith.constant 0 : index
    %c0_3 = arith.constant 0 : index
    %4 = vector.load %arg6[%c0_2, %c0_3] : memref<8x1xf32, #tpu.memory_space<vmem>>, vector<8x1xf32>
    %cst = arith.constant dense<0xFF800000> : vector<8xf32>
    %5 = vector.multi_reduction <maximumf>, %3, %cst [1] : vector<8x64xf32> to vector<8xf32>
    %6 = vector.shape_cast %5 : vector<8xf32> to vector<8x1xf32>
    %7 = arith.maximumf %4, %6 : vector<8x1xf32>
    %8 = vector.broadcast %7 : vector<8x1xf32> to vector<8x64xf32>
    %9 = arith.subf %3, %8 : vector<8x64xf32>
    %10 = math.exp %9 : vector<8x64xf32>
    %11 = arith.subf %4, %7 : vector<8x1xf32>
    %12 = math.exp %11 : vector<8x1xf32>
    %c0_4 = arith.constant 0 : index
    %c0_5 = arith.constant 0 : index
    %13 = vector.load %arg7[%c0_4, %c0_5] : memref<8x1xf32, #tpu.memory_space<vmem>>, vector<8x1xf32>
    %14 = arith.mulf %12, %13 : vector<8x1xf32>
    %cst_6 = arith.constant dense<0.000000e+00> : vector<8xf32>
    %15 = vector.multi_reduction <add>, %10, %cst_6 [1] : vector<8x64xf32> to vector<8xf32>
    %16 = vector.shape_cast %15 : vector<8xf32> to vector<8x1xf32>
    %17 = arith.addf %14, %16 : vector<8x1xf32>
    %c0_7 = arith.constant 0 : index
    %c0_8 = arith.constant 0 : index
    %18 = vector.load %arg7[%c0_7, %c0_8] : memref<8x1xf32, #tpu.memory_space<vmem>>, vector<8x1xf32>
    tpu.vector_store %arg7[%c0_7, %c0_8], %17 {strides = array<i32>} : memref<8x1xf32, #tpu.memory_space<vmem>>, vector<8x1xf32>,
    %c0_9 = arith.constant 0 : index
    %c0_10 = arith.constant 0 : index
    %19 = vector.load %arg6[%c0_9, %c0_10] : memref<8x1xf32, #tpu.memory_space<vmem>>, vector<8x1xf32>
    tpu.vector_store %arg6[%c0_9, %c0_10], %7 {strides = array<i32>} : memref<8x1xf32, #tpu.memory_space<vmem>>, vector<8x1xf32>,
    %c0_i32_11 = arith.constant 0 : i32
    %20 = arith.cmpi eq, %arg1, %c0_i32_11 : i32
    %21 = arith.extui %20 : i1 to i32
    %c0_i32_12 = arith.constant 0 : i32
    %22 = arith.cmpi ne, %21, %c0_i32_12 : i32
    scf.if %22 {
      %c0_13 = arith.constant 0 : index
      %c0_14 = arith.constant 0 : index
      %23 = vector.load %arg6[%c0_13, %c0_14] : memref<8x1xf32, #tpu.memory_space<vmem>>, vector<8x1xf32>
      %c0_15 = arith.constant 0 : index
      %c0_16 = arith.constant 0 : index
      %24 = vector.load %arg7[%c0_15, %c0_16] : memref<8x1xf32, #tpu.memory_space<vmem>>, vector<8x1xf32>
      %25 = math.log %24 : vector<8x1xf32>
      %26 = arith.addf %23, %25 : vector<8x1xf32>
      %c0_17 = arith.constant 0 : index
      %c0_18 = arith.constant 0 : index
      %27 = vector.load %arg3[%c0_17, %c0_18] : memref<8x128xf32, #tpu.memory_space<vmem>>, vector<8x128xf32>
      %28 = vector.extract_strided_slice %27 {offsets = [0, 8], sizes = [8, 1], strides = [1, 1]} : vector<8x128xf32> to vector<8x1xf32>
      %29 = arith.subf %26, %28 : vector<8x1xf32>
      %c0_19 = arith.constant 0 : index
      %c0_20 = arith.constant 0 : index
      %30 = vector.load %arg4[%c0_19, %c0_20] : memref<8x1xf32, #tpu.memory_space<vmem>>, vector<8x1xf32>
      tpu.vector_store %arg4[%c0_19, %c0_20], %29 {strides = array<i32>} : memref<8x1xf32, #tpu.memory_space<vmem>>, vector<8x1xf32>,
      %31 = tpu.reciprocal %24 {approx = true} : vector<8x1xf32> -> vector<8x1xf32>
      %32 = vector.broadcast %23 : vector<8x1xf32> to vector<8x128xf32>
      %33 = arith.subf %27, %32 : vector<8x128xf32>
      %34 = math.exp %33 : vector<8x128xf32>
      %35 = vector.broadcast %31 : vector<8x1xf32> to vector<8x128xf32>
      %36 = arith.mulf %34, %35 : vector<8x128xf32>
      %37 = tpu.iota {dimensions = array<i32: 1>} : vector<8x128xi32>
      %c8_i32 = arith.constant 8 : i32
      %38 = vector.broadcast %c8_i32 : i32 to vector<8x128xi32>
      %39 = arith.cmpi slt, %37, %38 : vector<8x128xi32>
      %cst_21 = arith.constant 0.000000e+00 : f32
      %40 = vector.broadcast %cst_21 : f32 to vector<8x128xf32>
      %41 = arith.subf %40, %36 : vector<8x128xf32>
      %42 = math.log1p %41 : vector<8x128xf32>
      %cst_22 = arith.constant 0.000000e+00 : f32
      %43 = vector.broadcast %cst_22 : f32 to vector<8x128xf32>
      %44 = arith.select %39, %42, %43 : vector<8x128xi1>, vector<8x128xf32>
      %cst_23 = arith.constant dense<0.000000e+00> : vector<8xf32>
      %45 = vector.multi_reduction <add>, %44, %cst_23 [1] : vector<8x128xf32> to vector<8xf32>
      %46 = vector.shape_cast %45 : vector<8xf32> to vector<8x1xf32>
      %cst_24 = arith.constant 0.000000e+00 : f32
      %47 = vector.broadcast %cst_24 : f32 to vector<8x1xf32>
      %48 = arith.subf %47, %46 : vector<8x1xf32>
      %c0_25 = arith.constant 0 : index
      %c0_26 = arith.constant 0 : index
      %49 = vector.load %arg5[%c0_25, %c0_26] : memref<8x1xf32, #tpu.memory_space<vmem>>, vector<8x1xf32>
      tpu.vector_store %arg5[%c0_25, %c0_26], %48 {strides = array<i32>} : memref<8x1xf32, #tpu.memory_space<vmem>>, vector<8x1xf32>,
    } else {
    }
    return
  }
  func.func @transform_0(%arg0: i32, %arg1: i32) -> (i32, i32) {
    %c0_i32 = arith.constant 0 : i32
    return %arg0, %arg1 : i32, i32
  }
  func.func @transform_1(%arg0: i32, %arg1: i32) -> (i32, i32) {
    %c0_i32 = arith.constant 0 : i32
    %c0_i32_0 = arith.constant 0 : i32
    return %arg0, %c0_i32 : i32, i32
  }
  func.func @transform_2(%arg0: i32, %arg1: i32) -> (i32, i32) {
    %c0_i32 = arith.constant 0 : i32
    %c0_i32_0 = arith.constant 0 : i32
    return %arg0, %c0_i32 : i32, i32
  }
  func.func @transform_3(%arg0: i32, %arg1: i32) -> (i32, i32) {
    %c0_i32 = arith.constant 0 : i32
    %c0_i32_0 = arith.constant 0 : i32
    return %arg0, %c0_i32 : i32, i32
  }
}

</mosaic_0001>

<bundles_post_ra>
// kernel: tpu_custom_call.1
= control target key start
LH: loop header
LB: loop body
LE: loop exit
PB: predicated region body
PF: predicated region fallthrough
CT: control target
= control target key end

     0   :  { %9 = vsyncpa [#allocation5], 0  ;;  %s809_s0 = inlined_call_operand.hbm [shape: f32[16,64], index: 0, kind: input, shape index: {}]   ;;  %s810_s1 = inlined_call_operand.hbm [shape: f32[16,128], index: 1, kind: input, shape index: {}]   ;;  %s811_s2 = inlined_call_operand.vmem [shape: f32[16,1], index: 2, kind: output, shape index: {0}]   ;;  %s812_s3 = inlined_call_operand.vmem [shape: f32[16,1], index: 3, kind: output, shape index: {1}]  }
   0x1   :  { %11 = vsyncpa [#allocation5 + $0x1], 0 }
   0x2   :  { %12 = vsyncpa [#allocation7], 0 }
   0x3   :  { %14 = vsyncpa [#allocation7 + $0x1], 0  ;;  %s697_s12 = smov 0   ;;  %s699_s13 = smov 0  }
   0x4   :  { %s701_s14 = smov 0   ;;  %s703_s15 = smov 0  }
   0x5   :  { %s705_s16 = smov 0   ;;  %s707_s17 = smov 0  }
   0x6 LB: > { %s463_s18 = sadd.s32 4294967295, %s671_s17   ;;  %s32_s19 = sadd.s32 1, %s667_s16  ;;  %s671_s17 = sphi %s707_s17, %s20_s17   ;;  %s667_s16 = sphi %s705_s16, %s819_s16   ;;  %s663_s15 = sphi %s703_s15, %s818_s15   ;;  %s659_s14 = sphi %s701_s14, %s817_s14   ;;  %s655_s13 = sphi %s699_s13, %s816_s13   ;;  %s651_s12 = sphi %s697_s12, %s815_s12  }
   0x7   : > { %p34_p0 = scmp.ge.s32.totalorder %s32_s19, 2  ;;  %s41_s20 = sadd.s32 1, %s659_s14 }
   0x8   : > { %p48_p1 = scmp.ne.s32.totalorder %s659_s14, %s655_s13  ;;  %p49_p2 = scmp.eq.s32.totalorder %s671_s17, 0 }
   0x9   : > { %s821_s19 = smov (%p34_p0, %s32_s19), 0  ;;  %p54_p4 = scmp.ne.s32.totalorder %s655_s13, %s651_s12 }
   0xa   : > { %p733_p3 = por %p49_p2, %p48_p1  ;;  %s36_s22 = ssub.s32 %s667_s16, %s821_s19 }
   0xb   : > { %p55_p5 = scmp.eq.s32.totalorder %s463_s18, 0  ;;  %p39_p6 = scmp.eq.s32.totalorder %s36_s22, 0 }
   0xc   : > { %p489_p8 = scmp.lt.s32.totalorder %s671_s17, 2  ;;  %s156_s25 = sand.u32 1, %s659_s14  }
   0xd   : > { %p740_p7 = por %p55_p5, %p54_p4  ;;  %s468_s26 = sshll.u32 %s667_s16, 3 }
   0xe   : > { %s746_s24 = scalar_select %p39_p6, %s659_s14, %s41_s20  }
   0xf   : > { %s467_s27 = sshll.u32 %s156_s25, 3  ;;  %s165_s30 = scalar_lea.hbm %s809_s0, %s468_s26 }
  0x10   : > { %s167_s4 = sshll.u32 %s165_s30, 4  ;;  %s160_s5 = scalar_lea.vmem [#allocation4], %s467_s27  ;;  %s168_s4 = int_to_ptr.hbm [resolvable:$true] %s167_s4 }
  0x11   : > { %s169_s6 = sshll.u32 %s160_s5, 4  ;;  %p483_p9 = pnand %p489_p8, %p733_p3  ;;  %s170_s6 = int_to_ptr.vmem [resolvable:$true] %s169_s6 }
  0x12   : > { %p471_p10 = scmp.ge.s32.totalorder %s671_s17, 1  ;;  %p193_p11 = scmp.lt.s32.totalorder %s671_s17, 3 }
  0x13   : > { %s157_s7 = scalar_lea.sflag [#allocation5], %s156_s25  ;;  %s184_s10 = scalar_lea.hbm %s810_s1, %s468_s26 }
  0x14   : > { %485 = dma.hbm_to_vmem [thread:$0]  (!%p483_p9), %s168_s4, 128, %s170_s6, %s157_s7  }
  0x15   : > { %p194_p12 = pnand %p471_p10, %p193_p11  ;;  %s186_s11 = sshll.u32 %s184_s10, 4  ;;  %s187_s11 = int_to_ptr.hbm [resolvable:$true] %s186_s11 }
  0x16   : > { %s180_s12 = scalar_lea.vmem [#allocation6], %s467_s27  ;;  %s177_s20 = scalar_lea.sflag [#allocation7], %s156_s25 }
  0x17   : > { %s188_s18 = sshll.u32 %s180_s12, 4  ;;  %197 = sbr.rel (%p194_p12) target bundleno = 638 (0x27e), region = 28  ;;  %s189_s18 = int_to_ptr.vmem [resolvable:$true] %s188_s18 }
  0x18   : > { %488 = dma.hbm_to_vmem [thread:$0]  (!%p483_p9), %s187_s11, 128, %s189_s18, %s177_s20  }
  0x19   : > { %s199_s21 = sand.u32 (!%p194_p12), 1, %s655_s13  }
  0x1a   : > { %s472_s22 = sshll.u32 (!%p194_p12), %s199_s21, 3  ;;  %s200_s28 = scalar_lea.sflag (!%p194_p12), [#allocation5], %s199_s21 }
  0x1b   : > { %s203_s29 = scalar_lea.vmem (!%p194_p12), [#allocation4], %s472_s22 }
  0x1c   : > { %642 = dma.done.wait (%p740_p7), %s200_s28, 128  }
  0x1d   : > { %644 = vsyncadd (%p740_p7), %s200_s28, 4294967168  ;;  %s210_s26 = scalar_lea.sflag [#allocation7], %s199_s21  ;;  %s765_s27 = scalar_lea.vmem [#allocation6], %s472_s22 }
  0x1e   : > { %646 = dma.done.wait (%p740_p7), %s210_s26, 128  }
  0x1f   : > { %648 = vsyncadd (%p740_p7), %s210_s26, 4294967168  ;;  %vm257_vm0 = vcmask 7168   ;;  %v673_v0 = vmov -inf   ;;  %vm262_vm1 = vcmask 523264   ;;  %v260_v1 = vld [vmem:[%s203_s29] sm:$0xff]  ;;  %v674_v3 = vmov 0  }
  0x20   : > { %258 = vst.msk [vmem:[#allocation2] sm:$0xff] %vm257_vm0, %v673_v0  ;;  %v263_v2 = vsel %vm262_vm1, %v260_v1, -inf  ;;  %542 = vset.pattern.permute.xlu0 %v674_v3  ;;  %543 = vset.pattern.permute.xlu1 %v674_v3  ;;  %v675_v4 = vmov 0.0   ;;  %v295_v15 = vld [vmem:[%s765_s27] sm:$0xff]  ;;  %s676_s23 = smov 120   ;;  %p245_p13 = scmp.lt.s32.totalorder %s663_s15, 1  ;;  %v317_v37 = vlaneseq }
  0x21   : > { %264 = vmax.xlane.f32.xlu0 %v263_v2  ;;  %544 = vset.pattern.permute.xlu2 %v674_v3  ;;  %259 = vst.msk [vmem:[#allocation3] sm:$0xff] %vm257_vm0, %v675_v4 }
  0x22   : > { %s823_s15 = smov (!%p245_p13, %s663_s15), 1  ;;  %v318_v39 = vand.u32 127, %v317_v37 }
  0x23   : > { %s474_s25 = sshll.u32 %s823_s15, 3 }
  0x24   : > { %s248_s5 = scalar_lea.vmem %s811_s2, %s474_s25  ;;  %vm319_vm2 = vcmp.lt.s32.totalorder %v318_v39, 8  ;;  %s252_s7 = scalar_lea.vmem %s812_s3, %s474_s25 }
  0x27   : > { %v261_v5 = vld [vmem:[#allocation2] sm:$0xff] }
  0x28   : > { %v278_v18 = vld [vmem:[#allocation3] sm:$0xff] }
  0x94   : > { %v265_v6 = vpop.xlane.xlu0 %264 }
  0x95   : > { %v266_v7 = vmax.f32 %v261_v5, %v265_v6 }
  0x97   : > { %v275_v8 = vsub.f32 %v261_v5, %v266_v7  ;;  %286 = vst.msk [vmem:[#allocation2] sm:$0xff] %vm257_vm0, %v266_v7  ;;  %269 = vperm.xlu0 %542, %v266_v7  }
  0x99   : > { %v276_v16 = vmul.f32 1.442695, %v275_v8 }
  0x9e   : > { %v290_v14 = vld [vmem:[#allocation2] sm:$0xff] }
 0x109   : > { %v270_v9 = vpop.permute.xlu0 %269 }
 0x10a   : > { %v272_v10 = vsub.f32 %v260_v1, %v270_v9 }
 0x10c   : > { %v273_v11 = vmul.f32 1.442695, %v272_v10 }
 0x10e   : > { %545 = vpow2.f32 %v273_v11 }
 0x10f   : > { %547 = vpow2.f32 %v276_v16 }
 0x114   : > { %v546_v12 = vpop.eup %545 }
 0x115   : > { %v280_v13 = vsel %vm262_vm1, %v546_v12, 0.0  ;;  %v548_v17 = vpop.eup %547 }
 0x116   : > { %281 = vadd.xlane.f32.xlu1 %v280_v13  ;;  %v279_v19 = vmul.f32 %v548_v17, %v278_v18 }
 0x12f   : > { %305 = vperm.xlu1 %543, %v290_v14  }
 0x137   : > { %297 = vrot.lane.b32.xlu1 %v295_v15, %s676_s23 }
 0x189   : > { %v282_v20 = vpop.xlane.xlu1 %281 }
 0x18a   : > { %v283_v21 = vadd.f32 %v282_v20, %v279_v19 }
 0x18c   : > { %285 = vst.msk [vmem:[#allocation3] sm:$0xff] %vm257_vm0, %v283_v21 }
 0x193   : > { %v291_v22 = vld [vmem:[#allocation3] sm:$0xff] }
 0x194   : > { %549 = vrcp.f32 %v291_v22 }
 0x195   : > { %551 = vlog2.f32 %v291_v22 }
 0x19a   : > { %v550_v23 = vpop.eup %549 }
 0x19b   : > { %313 = vperm.xlu2 %544, %v550_v23   ;;  %v552_v24 = vpop.eup %551 }
 0x19c   : > { %v293_v26 = vmul.f32 0.6931472, %v552_v24 }
 0x19e   : > { %v294_v27 = vadd.f32 %v293_v26, %v290_v14 }
 0x1a1   : > { %v306_v25 = vpop.permute.xlu1 %305 }
 0x1a2   : > { %v308_v30 = vsub.f32 %v295_v15, %v306_v25 }
 0x1a4   : > { %v309_v31 = vmul.f32 1.442695, %v308_v30 }
 0x1a6   : > { %553 = vpow2.f32 %v309_v31 }
 0x1a9   : > { %v298_v28 = vpop.permute.xlu1 %297 }
 0x1aa   : > { %v300_v29 = vsub.f32 %v294_v27, %v298_v28 }
 0x1ac   : > { %301 = vst.msk [vmem:[%s248_s5] sm:$0xff] %vm257_vm0, %v300_v29  ;;  %v554_v32 = vpop.eup %553 }
 0x1f5   : > { %v314_v33 = vpop.permute.xlu2 %313 }
 0x1f6   : > { %v316_v34 = vmul.f32 %v554_v32, %v314_v33 }
 0x1f8   : > { %v320_v35 = vsub.f32 0.0, %v316_v34 }
 0x1fa   : > { %v321_v36 = vadd.f32 1.0, %v320_v35  ;;  %v324_v38 = vmul.f32 -0.5, %v320_v35  ;;  %v327_v41 = vand.u32 2147483647, %v320_v35 }
 0x1fc   : > { %555 = vlog2.f32 %v321_v36  ;;  %v325_v40 = vadd.f32 1.0, %v324_v38  ;;  %vm328_vm3 = vcmp.lt.f32.partialorder %v327_v41, 0.0004427343 }
 0x1fe   : > { %v326_v44 = vmul.f32 %v325_v40, %v320_v35 }
 0x202   : > { %v556_v42 = vpop.eup %555 }
 0x203   : > { %v323_v43 = vmul.f32 0.6931472, %v556_v42 }
 0x205   : > { %v329_v45 = vsel %vm328_vm3, %v326_v44, %v323_v43 }
 0x206   : > { %v330_v46 = vsel %vm319_vm2, %v329_v45, 0.0 }
 0x207   : > { %331 = vadd.xlane.f32.xlu2 %v330_v46 }
 0x27a   : > { %v332_v47 = vpop.xlane.xlu2 %331 }
 0x27b   : > { %v333_v48 = vsub.f32 0.0, %v332_v47 }
 0x27d   : > { %334 = vst.msk [vmem:[%s252_s7] sm:$0xff] %vm257_vm0, %v333_v48 }
 0x27e PF: > { %s20_s17 = sadd.s32 1, %s671_s17   ;;  %s815_s12 = smov %s655_s13 }
 0x27f   : > { %p17_p0 = scmp.ge.s32.totalorder %s20_s17, 4   ;;  %s816_s13 = smov %s659_s14 }
 0x280   : > { %s817_s14 = smov %s746_s24  ;;  %s818_s15 = smov %s667_s16 }
 0x281   : > { %s819_s16 = smov %s821_s19  ;;  %19 = sbr.rel (!%p17_p0) target bundleno = 6 (0x6), region = 101 }
 0x286   :  { %368 = vsyncpa [#allocation5], 1 }
 0x287   :  { %370 = vsyncpa [#allocation5 + $0x1], 1 }
 0x288   :  { %371 = vsyncpa [#allocation7], 1 }
 0x289   :  { %373 = vsyncpa [#allocation7 + $0x1], 1 }

</bundles_post_ra>
